<compile_context>
chip_gen: v5e
topology: v5e:2x2
jax: 0.10.0
libtpu: 0.0.40
codegen_flags: <defaults>
</compile_context>

<pallas_src>
import functools

import jax
import jax.numpy as jnp
from jax.experimental import pallas as pl
from jax.experimental.pallas import tpu as pltpu

F_IN = 11        # real input feature count (after torch.flatten(x, 1))
F_IN_PAD = 128   # lane-aligned K for the first matmul (padded inside kernel)
H = 256          # hidden width
TB_MAX = 4096    # max batch rows per grid step (~13 MiB peak VMEM at this size)


def _round_up(n, m):
    return ((n + m - 1) // m) * m


def _cdiv(a, b):
    return (a + b - 1) // b


def _choose_tiling(batch):
    """Pick (TB, nb, B_pad): large tiles to amortize per-step overhead, minimal
    remainder padding, and an even step count when splitting so the batch axis
    balances across v7x's two TensorCores."""
    b8 = _round_up(max(batch, 1), 8)
    nb = _cdiv(b8, TB_MAX)
    if b8 >= 1024:               # enough rows that a 2-way split is worthwhile (v7x)
        nb = max(nb, 2)
    if nb > 1 and nb % 2 == 1:   # even step count for dual-TensorCore balance
        nb += 1
    tb = _round_up(_cdiv(b8, nb), 8)
    return tb, nb, nb * tb


def value_mlp_kernel(x_ref, w1_ref, b1_ref, w2_ref, b2_ref,
                     w3_ref, b3_ref, w4_ref, b4_ref, o_ref):
    # x_ref: (TB, 11) f32 tile. Pad to 128 lanes in-register (no HBM cost) and
    # cast to bf16 so layer 1 is a single native-rate MXU pass (f32 accumulate).
    x = x_ref[...]
    tb = x.shape[0]
    x = jnp.concatenate(
        [x, jnp.zeros((tb, F_IN_PAD - F_IN), dtype=x.dtype)], axis=-1)  # (TB,128)
    x = x.astype(jnp.bfloat16)

    # Layer 1: bf16 MXU matmul, f32 accumulation, f32 bias + ReLU.
    h = jnp.dot(x, w1_ref[...], preferred_element_type=jnp.float32) + b1_ref[...]
    h = jnp.maximum(h, 0.0)

    # Layers 2 & 3: bf16 MXU matmuls, f32 accumulation, f32 bias + ReLU.
    h = jnp.dot(h.astype(jnp.bfloat16), w2_ref[...],
                preferred_element_type=jnp.float32) + b2_ref[...]
    h = jnp.maximum(h, 0.0)
    h = jnp.dot(h.astype(jnp.bfloat16), w3_ref[...],
                preferred_element_type=jnp.float32) + b3_ref[...]
    h = jnp.maximum(h, 0.0)

    # Layer 4 (256 -> 1): row-wise dot as VPU multiply + lane reduction,
    # avoiding an N=1 MXU matmul and any padded output columns.
    o_ref[...] = jnp.sum(h * w4_ref[...], axis=-1, keepdims=True) + b4_ref[...]


def init_params(key):
    """PyTorch-Linear-style init: U(-1/sqrt(fan_in), 1/sqrt(fan_in)). f32 master params."""
    def linear(k, fan_in, fan_out):
        kw, kb = jax.random.split(k)
        bound = 1.0 / jnp.sqrt(jnp.float32(fan_in))
        w = jax.random.uniform(kw, (fan_in, fan_out), jnp.float32, -bound, bound)
        b = jax.random.uniform(kb, (fan_out,), jnp.float32, -bound, bound)
        return w, b

    k1, k2, k3, k4 = jax.random.split(key, 4)
    w1, b1 = linear(k1, F_IN, H)
    w2, b2 = linear(k2, H, H)
    w3, b3 = linear(k3, H, H)
    w4, b4 = linear(k4, H, 1)
    return (w1, b1, w2, b2, w3, b3, w4, b4)


def prepare_params(params):
    """One-time parameter preprocessing (padding / transposes / bf16 casts)."""
    w1, b1, w2, b2, w3, b3, w4, b4 = params
    w1p = (jnp.zeros((F_IN_PAD, H), jnp.float32)
           .at[:F_IN, :].set(w1).astype(jnp.bfloat16))                  # zero K-pad, bf16
    b1r = b1.reshape(1, H).astype(jnp.float32)
    w2b = w2.astype(jnp.bfloat16)
    b2r = b2.reshape(1, H).astype(jnp.float32)
    w3b = w3.astype(jnp.bfloat16)
    b3r = b3.reshape(1, H).astype(jnp.float32)
    w4r = w4.reshape(H, 1).T.astype(jnp.float32)                         # (1, 256)
    b4r = b4.reshape(1, 1).astype(jnp.float32)
    return (w1p, b1r, w2b, b2r, w3b, b3r, w4r, b4r)


@jax.jit
def value_forward(x, prepped):
    """x: (B, ...) -> (B, 1) float32, matching Value.forward semantics."""
    w1p, b1r, w2b, b2r, w3b, b3r, w4r, b4r = prepped
    B = x.shape[0]
    x = x.reshape(B, -1).astype(jnp.float32)        # torch.flatten(x, 1)

    TB, nb, B_pad = _choose_tiling(B)
    if B_pad != B:
        x = jnp.pad(x, ((0, B_pad - B), (0, 0)))    # small remainder pad only

    const = lambda shape: pl.BlockSpec(shape, lambda i: (0,) * len(shape))

    flops = 2 * B_pad * (F_IN * H + H * H + H * H + H)
    bytes_accessed = (B_pad * F_IN * 4 + B_pad * 4          # x in, y out
                      + F_IN_PAD * H * 2 + 2 * H * H * 2    # bf16 weights
                      + H * 4 + 3 * H * 4 + 4)              # w4 + biases

    out = pl.pallas_call(
        value_mlp_kernel,
        out_shape=jax.ShapeDtypeStruct((B_pad, 1), jnp.float32),
        grid=(nb,),
        in_specs=[
            pl.BlockSpec((TB, F_IN), lambda i: (i, 0)),     # x tile streams per step
            const((F_IN_PAD, H)), const((1, H)),            # weights/biases VMEM-resident
            const((H, H)), const((1, H)),
            const((H, H)), const((1, H)),
            const((1, H)), const((1, 1)),
        ],
        out_specs=pl.BlockSpec((TB, 1), lambda i: (i, 0)),
        compiler_params=pltpu.CompilerParams(
            dimension_semantics=("parallel",),
            vmem_limit_bytes=32 * 1024 * 1024),
        cost_estimate=pl.CostEstimate(
            flops=int(flops), transcendentals=0,
            bytes_accessed=int(bytes_accessed)),
    )(x, w1p, b1r, w2b, b2r, w3b, b3r, w4r, b4r)

    return out[:B]


def value_forward_ref(x, params):
    """Plain-JAX reference with the same bf16 quantization / f32 accumulation."""
    w1, b1, w2, b2, w3, b3, w4, b4 = params
    x = x.reshape(x.shape[0], -1).astype(jnp.float32)
    h = jnp.dot(x.astype(jnp.bfloat16), w1.astype(jnp.bfloat16),
                preferred_element_type=jnp.float32) + b1
    h = jnp.maximum(h, 0.0)
    h = jnp.dot(h.astype(jnp.bfloat16), w2.astype(jnp.bfloat16),
                preferred_element_type=jnp.float32) + b2
    h = jnp.maximum(h, 0.0)
    h = jnp.dot(h.astype(jnp.bfloat16), w3.astype(jnp.bfloat16),
                preferred_element_type=jnp.float32) + b3
    h = jnp.maximum(h, 0.0)
    return h @ w4 + b4


if __name__ == "__main__":
    key = jax.random.PRNGKey(0)
    kp, kx1, kx2, kx3 = jax.random.split(key, 4)
    params = init_params(kp)
    prepped = prepare_params(params)

    def check(x):
        out = jax.block_until_ready(value_forward(x, prepped))
        ref = value_forward_ref(x, params)
        assert out.shape == (x.shape[0], 1), out.shape
        assert jnp.allclose(out, ref, atol=3e-3, rtol=3e-3), (
            float(jnp.max(jnp.abs(out - ref))))

    # Small batch: single grid step, TB == 8.
    check(jax.random.normal(kx1, (8, F_IN), jnp.float32))

    # Medium batch: splits into nb=2 steps of TB=600 rows, no remainder padding.
    check(jax.random.normal(kx2, (1200, F_IN), jnp.float32))

    # Large batch: nb rounded up to 4 (even), TB=2256, small remainder padding.
    check(jax.random.normal(kx3, (9000, F_IN), jnp.float32))

    print("KERNEL_OK")
</pallas_src>

<mosaic_0001>
module attributes {stable_mosaic.version = 11 : i64} {
  func.func @value_mlp_kernel(%arg0: i32, %arg1: memref<8x11xf32, #tpu.memory_space<vmem>>, %arg2: memref<128x256xbf16, #tpu.memory_space<vmem>>, %arg3: memref<1x256xf32, #tpu.memory_space<vmem>>, %arg4: memref<256x256xbf16, #tpu.memory_space<vmem>>, %arg5: memref<1x256xf32, #tpu.memory_space<vmem>>, %arg6: memref<256x256xbf16, #tpu.memory_space<vmem>>, %arg7: memref<1x256xf32, #tpu.memory_space<vmem>>, %arg8: memref<1x256xf32, #tpu.memory_space<vmem>>, %arg9: memref<1x1xf32, #tpu.memory_space<vmem>>, %arg10: memref<8x1xf32, #tpu.memory_space<vmem>>) attributes {dimension_semantics = [#tpu.dimension_semantics<parallel>], iteration_bounds = array<i64: 1>, scalar_prefetch = 0 : i64, scratch_operands = 0 : i64, tpu.core_type = #tpu.core_type<tc>, window_params = [{transform_indices = @transform_0, window_bounds = array<i64: 8, 11>}, {pipeline_mode = #tpu.pipeline_mode<synchronous>, transform_indices = @transform_1, window_bounds = array<i64: 128, 256>}, {pipeline_mode = #tpu.pipeline_mode<synchronous>, transform_indices = @transform_2, window_bounds = array<i64: 1, 256>}, {pipeline_mode = #tpu.pipeline_mode<synchronous>, transform_indices = @transform_3, window_bounds = array<i64: 256, 256>}, {pipeline_mode = #tpu.pipeline_mode<synchronous>, transform_indices = @transform_4, window_bounds = array<i64: 1, 256>}, {pipeline_mode = #tpu.pipeline_mode<synchronous>, transform_indices = @transform_5, window_bounds = array<i64: 256, 256>}, {pipeline_mode = #tpu.pipeline_mode<synchronous>, transform_indices = @transform_6, window_bounds = array<i64: 1, 256>}, {pipeline_mode = #tpu.pipeline_mode<synchronous>, transform_indices = @transform_7, window_bounds = array<i64: 1, 256>}, {pipeline_mode = #tpu.pipeline_mode<synchronous>, transform_indices = @transform_8, window_bounds = array<i64: 1, 1>}, {transform_indices = @transform_9, window_bounds = array<i64: 8, 1>}]} {
    %c0 = arith.constant 0 : index
    %c0_0 = arith.constant 0 : index
    %0 = vector.load %arg1[%c0, %c0_0] : memref<8x11xf32, #tpu.memory_space<vmem>>, vector<8x11xf32>
    %cst = arith.constant 0.000000e+00 : f32
    %1 = vector.broadcast %cst : f32 to vector<8x117xf32>
    %2 = tpu.concatenate %0, %1 in 1 : vector<8x11xf32>, vector<8x117xf32> -> vector<8x128xf32>
    %3 = arith.truncf %2 : vector<8x128xf32> to vector<8x128xbf16>
    %c0_1 = arith.constant 0 : index
    %c0_2 = arith.constant 0 : index
    %4 = vector.load %arg2[%c0_1, %c0_2] : memref<128x256xbf16, #tpu.memory_space<vmem>>, vector<128x256xbf16>
    %cst_3 = arith.constant dense<0.000000e+00> : vector<8x256xf32>
    %5 = tpu.matmul %3, %4, %cst_3 {dimension_numbers = #tpu.dot_dimension_numbers<[1], [0], [0], [1], [0, 0, 1, 1], [], []>} : vector<8x128xbf16>, vector<128x256xbf16>, vector<8x256xf32> -> vector<8x256xf32>
    %c0_4 = arith.constant 0 : index
    %c0_5 = arith.constant 0 : index
    %6 = vector.load %arg3[%c0_4, %c0_5] : memref<1x256xf32, #tpu.memory_space<vmem>>, vector<1x256xf32>
    %7 = vector.broadcast %6 : vector<1x256xf32> to vector<8x256xf32>
    %8 = arith.addf %5, %7 : vector<8x256xf32>
    %cst_6 = arith.constant 0.000000e+00 : f32
    %9 = vector.broadcast %cst_6 : f32 to vector<8x256xf32>
    %10 = arith.maximumf %8, %9 : vector<8x256xf32>
    %11 = arith.truncf %10 : vector<8x256xf32> to vector<8x256xbf16>
    %c0_7 = arith.constant 0 : index
    %c0_8 = arith.constant 0 : index
    %12 = vector.load %arg4[%c0_7, %c0_8] : memref<256x256xbf16, #tpu.memory_space<vmem>>, vector<256x256xbf16>
    %cst_9 = arith.constant dense<0.000000e+00> : vector<8x256xf32>
    %13 = tpu.matmul %11, %12, %cst_9 {dimension_numbers = #tpu.dot_dimension_numbers<[1], [0], [0], [1], [0, 0, 1, 1], [], []>} : vector<8x256xbf16>, vector<256x256xbf16>, vector<8x256xf32> -> vector<8x256xf32>
    %c0_10 = arith.constant 0 : index
    %c0_11 = arith.constant 0 : index
    %14 = vector.load %arg5[%c0_10, %c0_11] : memref<1x256xf32, #tpu.memory_space<vmem>>, vector<1x256xf32>
    %15 = vector.broadcast %14 : vector<1x256xf32> to vector<8x256xf32>
    %16 = arith.addf %13, %15 : vector<8x256xf32>
    %cst_12 = arith.constant 0.000000e+00 : f32
    %17 = vector.broadcast %cst_12 : f32 to vector<8x256xf32>
    %18 = arith.maximumf %16, %17 : vector<8x256xf32>
    %19 = arith.truncf %18 : vector<8x256xf32> to vector<8x256xbf16>
    %c0_13 = arith.constant 0 : index
    %c0_14 = arith.constant 0 : index
    %20 = vector.load %arg6[%c0_13, %c0_14] : memref<256x256xbf16, #tpu.memory_space<vmem>>, vector<256x256xbf16>
    %cst_15 = arith.constant dense<0.000000e+00> : vector<8x256xf32>
    %21 = tpu.matmul %19, %20, %cst_15 {dimension_numbers = #tpu.dot_dimension_numbers<[1], [0], [0], [1], [0, 0, 1, 1], [], []>} : vector<8x256xbf16>, vector<256x256xbf16>, vector<8x256xf32> -> vector<8x256xf32>
    %c0_16 = arith.constant 0 : index
    %c0_17 = arith.constant 0 : index
    %22 = vector.load %arg7[%c0_16, %c0_17] : memref<1x256xf32, #tpu.memory_space<vmem>>, vector<1x256xf32>
    %23 = vector.broadcast %22 : vector<1x256xf32> to vector<8x256xf32>
    %24 = arith.addf %21, %23 : vector<8x256xf32>
    %cst_18 = arith.constant 0.000000e+00 : f32
    %25 = vector.broadcast %cst_18 : f32 to vector<8x256xf32>
    %26 = arith.maximumf %24, %25 : vector<8x256xf32>
    %c0_19 = arith.constant 0 : index
    %c0_20 = arith.constant 0 : index
    %27 = vector.load %arg8[%c0_19, %c0_20] : memref<1x256xf32, #tpu.memory_space<vmem>>, vector<1x256xf32>
    %28 = vector.broadcast %27 : vector<1x256xf32> to vector<8x256xf32>
    %29 = arith.mulf %26, %28 : vector<8x256xf32>
    %cst_21 = arith.constant dense<0.000000e+00> : vector<8xf32>
    %30 = vector.multi_reduction <add>, %29, %cst_21 [1] : vector<8x256xf32> to vector<8xf32>
    %31 = vector.shape_cast %30 : vector<8xf32> to vector<8x1xf32>
    %c0_22 = arith.constant 0 : index
    %c0_23 = arith.constant 0 : index
    %32 = vector.load %arg9[%c0_22, %c0_23] : memref<1x1xf32, #tpu.memory_space<vmem>>, vector<1x1xf32>
    %33 = vector.broadcast %32 : vector<1x1xf32> to vector<8x1xf32>
    %34 = arith.addf %31, %33 : vector<8x1xf32>
    %c0_24 = arith.constant 0 : index
    %c0_25 = arith.constant 0 : index
    %35 = vector.load %arg10[%c0_24, %c0_25] : memref<8x1xf32, #tpu.memory_space<vmem>>, vector<8x1xf32>
    tpu.vector_store %arg10[%c0_24, %c0_25], %34 {strides = array<i32>} : memref<8x1xf32, #tpu.memory_space<vmem>>, vector<8x1xf32>,
    return
  }
  func.func @transform_0(%arg0: i32) -> (i32, i32) {
    %c0_i32 = arith.constant 0 : i32
    %c0_i32_0 = arith.constant 0 : i32
    return %arg0, %c0_i32 : i32, i32
  }
  func.func @transform_1(%arg0: i32) -> (i32, i32) {
    %c0_i32 = arith.constant 0 : i32
    %c0_i32_0 = arith.constant 0 : i32
    %c0_i32_1 = arith.constant 0 : i32
    return %c0_i32, %c0_i32_0 : i32, i32
  }
  func.func @transform_2(%arg0: i32) -> (i32, i32) {
    %c0_i32 = arith.constant 0 : i32
    %c0_i32_0 = arith.constant 0 : i32
    %c0_i32_1 = arith.constant 0 : i32
    return %c0_i32, %c0_i32_0 : i32, i32
  }
  func.func @transform_3(%arg0: i32) -> (i32, i32) {
    %c0_i32 = arith.constant 0 : i32
    %c0_i32_0 = arith.constant 0 : i32
    %c0_i32_1 = arith.constant 0 : i32
    return %c0_i32, %c0_i32_0 : i32, i32
  }
  func.func @transform_4(%arg0: i32) -> (i32, i32) {
    %c0_i32 = arith.constant 0 : i32
    %c0_i32_0 = arith.constant 0 : i32
    %c0_i32_1 = arith.constant 0 : i32
    return %c0_i32, %c0_i32_0 : i32, i32
  }
  func.func @transform_5(%arg0: i32) -> (i32, i32) {
    %c0_i32 = arith.constant 0 : i32
    %c0_i32_0 = arith.constant 0 : i32
    %c0_i32_1 = arith.constant 0 : i32
    return %c0_i32, %c0_i32_0 : i32, i32
  }
  func.func @transform_6(%arg0: i32) -> (i32, i32) {
    %c0_i32 = arith.constant 0 : i32
    %c0_i32_0 = arith.constant 0 : i32
    %c0_i32_1 = arith.constant 0 : i32
    return %c0_i32, %c0_i32_0 : i32, i32
  }
  func.func @transform_7(%arg0: i32) -> (i32, i32) {
    %c0_i32 = arith.constant 0 : i32
    %c0_i32_0 = arith.constant 0 : i32
    %c0_i32_1 = arith.constant 0 : i32
    return %c0_i32, %c0_i32_0 : i32, i32
  }
  func.func @transform_8(%arg0: i32) -> (i32, i32) {
    %c0_i32 = arith.constant 0 : i32
    %c0_i32_0 = arith.constant 0 : i32
    %c0_i32_1 = arith.constant 0 : i32
    return %c0_i32, %c0_i32_0 : i32, i32
  }
  func.func @transform_9(%arg0: i32) -> (i32, i32) {
    %c0_i32 = arith.constant 0 : i32
    %c0_i32_0 = arith.constant 0 : i32
    return %arg0, %c0_i32 : i32, i32
  }
}

</mosaic_0001>

<bundles_post_ra>
// kernel: value_forward.1
= control target key start
LH: loop header
LB: loop body
LE: loop exit
PB: predicated region body
PF: predicated region fallthrough
CT: control target
= control target key end

     0   :  { %s1363_s0 = inlined_call_operand.hbm [shape: f32[8,11], index: 0, kind: input, shape index: {}]   ;;  %s1364_s1 = inlined_call_operand.hbm [shape: bf16[128,256], index: 1, kind: input, shape index: {}]   ;;  %s1365_s2 = inlined_call_operand.vmem [shape: f32[1,256], index: 2, kind: input, shape index: {}]   ;;  %s1366_s3 = inlined_call_operand.hbm [shape: bf16[256,256], index: 3, kind: input, shape index: {}]   ;;  %s1367_s4 = inlined_call_operand.vmem [shape: f32[1,256], index: 4, kind: input, shape index: {}]   ;;  %s1368_s5 = inlined_call_operand.hbm [shape: bf16[256,256], index: 5, kind: input, shape index: {}]   ;;  %s1369_s6 = inlined_call_operand.vmem [shape: f32[1,256], index: 6, kind: input, shape index: {}]   ;;  %s1370_s7 = inlined_call_operand.vmem [shape: f32[1,256], index: 7, kind: input, shape index: {}]   ;;  %s1371_s8 = inlined_call_operand.<no memory space> [shape: f32[1,1], index: 8, kind: input, shape index: {}]   ;;  %s1372_s9 = inlined_call_operand.vmem [shape: f32[8,1], index: 9, kind: output, shape index: {}]  }
   0x1   :  { %v14_v0 = vstv %s1371_s8 }
   0x2   :  { %15 = vst [vmem:[#allocation2] sm:$0x1] %v14_v0 }
   0x3   :  { %16 = vsyncpa [#allocation4], 0 }
   0x4   :  { %17 = vsyncpa [#allocation6], 0  ;;  %s34_s13 = sshll.u32 %s1364_s1, 4  ;;  %s35_s13 = int_to_ptr.hbm [resolvable:$true] %s34_s13 }
   0x5   :  { %18 = vsyncpa [#allocation9], 0  ;;  %s1277_s14 = smov [#allocation5]   ;;  %s24_s18 = sshll.u32 %s1363_s0, 4  ;;  %s25_s18 = int_to_ptr.hbm [resolvable:$true] %s24_s18 }
   0x6   :  { %s36_s15 = sshll.u32 %s1277_s14, 4  ;;  %s1278_s19 = smov 128   ;;  %s37_s15 = int_to_ptr.vmem [resolvable:$true] %s36_s15 }
   0x7   :  { %s1279_s20 = smov 8   ;;  %s1280_s8 = smov [#allocation3]  }
   0x8   :  { %42 = dma.hbm_to_vmem [thread:$0]  %s35_s13, 2048, %s37_s15, [#allocation6], %s1278_s19, %s1278_s19, %s1279_s20  }
   0x9   :  { %s26_s21 = sshll.u32 %s1280_s8, 4  ;;  %s49_s24 = sshll.u32 %s1366_s3, 4  ;;  %s27_s21 = int_to_ptr.vmem [resolvable:$true] %s26_s21  ;;  %s50_s24 = int_to_ptr.hbm [resolvable:$true] %s49_s24 }
   0xa   :  { %29 = dma.hbm_to_vmem [thread:$0]  %s25_s18, 128, %s27_s21, [#allocation4]  }
   0xb   :  { %s64_s26 = sshll.u32 %s1368_s5, 4  ;;  %s1281_s27 = smov [#allocation7]   ;;  %s65_s26 = int_to_ptr.hbm [resolvable:$true] %s64_s26 }
   0xc   :  { %s51_s28 = sshll.u32 %s1281_s27, 4  ;;  %s1282_s0 = smov [#allocation8]   ;;  %s52_s28 = int_to_ptr.vmem [resolvable:$true] %s51_s28 }
   0xd   :  { %57 = dma.hbm_to_vmem [thread:$0]  %s50_s24, 4096, %s52_s28, [#allocation6], %s1278_s19, %s1278_s19, %s1279_s20  }
   0xe   :  { %s66_s29 = sshll.u32 %s1282_s0, 4  ;;  %s67_s29 = int_to_ptr.vmem [resolvable:$true] %s66_s29 }
   0xf   :  { %72 = dma.hbm_to_vmem [thread:$0]  %s65_s26, 4096, %s67_s29, [#allocation9], %s1278_s19, %s1278_s19, %s1279_s20  }
  0x10   :  { %1271 = dma.done.wait [#allocation4], 128  }
  0x11   :  { %1272 = vsyncadd [#allocation4], 4294967168 }
  0x12   :  { %1273 = dma.done.wait [#allocation6], 6144  }
  0x13   :  { %1274 = vsyncadd [#allocation6], 4294961152 }
  0x14   :  { %1275 = dma.done.wait [#allocation9], 4096  }
  0x15   :  { %1276 = vsyncadd [#allocation9], 4294963200  ;;  %v820_v1 = vld [vmem:[#allocation5 + $0x70] sm:$0xf]  ;;  %v1103_v2 = vld [vmem:[#allocation5 + $0x74] sm:$0xf0] }
  0x16   :  { %v1102_v3 = vld [vmem:[#allocation5 + $0x74] sm:$0xf]  ;;  %v821_v4 = vor.u32 %v1103_v2, %v820_v1  ;;  %v822_v5 = vld [vmem:[#allocation5 + $0x78] sm:$0xf0]  ;;  %v812_v6 = vld [vmem:[#allocation5 + $0x60] sm:$0xf] }
  0x17   :  { %v1101_v7 = vld [vmem:[#allocation5 + $0x64] sm:$0xf0]  ;;  %v825_v8 = vor.u32 %v1102_v3, %v822_v5  ;;  %v1100_v9 = vld [vmem:[#allocation5 + $0x64] sm:$0xf]  ;;  %v814_v10 = vld [vmem:[#allocation5 + $0x68] sm:$0xf0] }
  0x18   :  { %201 = vmatpush.bf16.msra.mxu0 %v821_v4  ;;  %v813_v11 = vor.u32 %v1101_v7, %v812_v6  ;;  %v817_v12 = vor.u32 %v1100_v9, %v814_v10  ;;  %v804_v13 = vld [vmem:[#allocation5 + $0x50] sm:$0xf]  ;;  %v1099_v14 = vld [vmem:[#allocation5 + $0x54] sm:$0xf0]  ;;  %v1098_v15 = vld [vmem:[#allocation5 + $0x54] sm:$0xf] }
  0x19   :  { %214 = vmatpush.bf16.msra.mxu1 %v825_v8  ;;  %v806_v16 = vld [vmem:[#allocation5 + $0x58] sm:$0xf0]  ;;  %v805_v17 = vor.u32 %v1099_v14, %v804_v13  ;;  %v796_v19 = vld [vmem:[#allocation5 + $0x40] sm:$0xf]  ;;  %v1097_v20 = vld [vmem:[#allocation5 + $0x44] sm:$0xf0] }
  0x1a   :  { %v809_v18 = vor.u32 %v1098_v15, %v806_v16  ;;  %v1096_v21 = vld [vmem:[#allocation5 + $0x44] sm:$0xf]  ;;  %v798_v22 = vld [vmem:[#allocation5 + $0x48] sm:$0xf0]  ;;  %v797_v23 = vor.u32 %v1097_v20, %v796_v19  ;;  %v788_v24 = vld [vmem:[#allocation5 + $0x30] sm:$0xf] }
  0x1b   :  { %v890_v25 = vld [vmem:[#allocation7 + $0x70] sm:$0xf]  ;;  %v1119_v26 = vld [vmem:[#allocation7 + $0x74] sm:$0xf0]  ;;  %v801_v27 = vor.u32 %v1096_v21, %v798_v22  ;;  %v1094_v32 = vld [vmem:[#allocation5 + $0x34] sm:$0xf] }
  0x1c   :  { %202 = vmatpush.bf16.msra.mxu0 %v813_v11  ;;  %v1095_v28 = vld [vmem:[#allocation5 + $0x34] sm:$0xf0]  ;;  %v891_v29 = vor.u32 %v1119_v26, %v890_v25  ;;  %v954_v30 = vld [vmem:[#allocation7 + $0xf0] sm:$0xf]  ;;  %v790_v33 = vld [vmem:[#allocation5 + $0x38] sm:$0xf0] }
  0x1d   :  { %215 = vmatpush.bf16.msra.mxu1 %v817_v12  ;;  %v1135_v31 = vld [vmem:[#allocation7 + $0xf4] sm:$0xf0]  ;;  %v882_v35 = vld [vmem:[#allocation7 + $0x60] sm:$0xf]  ;;  %v1117_v36 = vld [vmem:[#allocation7 + $0x64] sm:$0xf0]  ;;  %v789_v38 = vor.u32 %v1095_v28, %v788_v24  ;;  %v793_v43 = vor.u32 %v1094_v32, %v790_v33 }
  0x1e   :  { %v955_v34 = vor.u32 %v1135_v31, %v954_v30  ;;  %429 = vmatpush.bf16.msra.mxu2 %v891_v29  ;;  %v946_v37 = vld [vmem:[#allocation7 + $0xe0] sm:$0xf]  ;;  %v1093_v40 = vld [vmem:[#allocation5 + $0x24] sm:$0xf0]  ;;  %v883_v41 = vor.u32 %v1117_v36, %v882_v35  ;;  %v1092_v44 = vld [vmem:[#allocation5 + $0x24] sm:$0xf] }
  0x1f   :  { %v780_v39 = vld [vmem:[#allocation5 + $0x20] sm:$0xf]  ;;  %v1133_v42 = vld [vmem:[#allocation7 + $0xe4] sm:$0xf0]  ;;  %v782_v45 = vld [vmem:[#allocation5 + $0x28] sm:$0xf0] }
  0x20   :  { %203 = vmatpush.bf16.msra.mxu0 %v805_v17  ;;  %442 = vmatpush.bf16.msra.mxu3 %v955_v34  ;;  %v947_v46 = vor.u32 %v1133_v42, %v946_v37  ;;  %v874_v47 = vld [vmem:[#allocation7 + $0x50] sm:$0xf]  ;;  %v1115_v48 = vld [vmem:[#allocation7 + $0x54] sm:$0xf0]  ;;  %v781_v52 = vor.u32 %v1093_v40, %v780_v39  ;;  %v866_v55 = vld [vmem:[#allocation7 + $0x40] sm:$0xf]  ;;  %v785_v57 = vor.u32 %v1092_v44, %v782_v45 }
  0x21   :  { %216 = vmatpush.bf16.msra.mxu1 %v809_v18  ;;  %v938_v49 = vld [vmem:[#allocation7 + $0xd0] sm:$0xf]  ;;  %v1131_v50 = vld [vmem:[#allocation7 + $0xd4] sm:$0xf0]  ;;  %v875_v51 = vor.u32 %v1115_v48, %v874_v47  ;;  %v1113_v56 = vld [vmem:[#allocation7 + $0x44] sm:$0xf0] }
  0x22   :  { %430 = vmatpush.bf16.msra.mxu2 %v883_v41  ;;  %v772_v53 = vld [vmem:[#allocation5 + $0x10] sm:$0xf]  ;;  %v939_v54 = vor.u32 %v1131_v50, %v938_v49  ;;  %v1091_v58 = vld [vmem:[#allocation5 + $0x14] sm:$0xf0]  ;;  %v930_v59 = vld [vmem:[#allocation7 + $0xc0] sm:$0xf]  ;;  %v867_v0 = vor.u32 %v1113_v56, %v866_v55 }
  0x23   :  { %v1129_v60 = vld [vmem:[#allocation7 + $0xc4] sm:$0xf0]  ;;  %v1090_v61 = vld [vmem:[#allocation5 + $0x14] sm:$0xf]  ;;  %v774_v62 = vld [vmem:[#allocation5 + $0x18] sm:$0xf0]  ;;  %v773_v1 = vor.u32 %v1091_v58, %v772_v53 }
  0x24   :  { %204 = vmatpush.bf16.msra.mxu0 %v797_v23  ;;  %443 = vmatpush.bf16.msra.mxu3 %v947_v46  ;;  %v764_v63 = vld [vmem:[#allocation5] sm:$0xf]  ;;  %v1089_v2 = vld [vmem:[#allocation5 + $0x4] sm:$0xf0]  ;;  %v931_v3 = vor.u32 %v1129_v60, %v930_v59  ;;  %v858_v4 = vld [vmem:[#allocation7 + $0x30] sm:$0xf]  ;;  %v777_v6 = vor.u32 %v1090_v61, %v774_v62 }
  0x25   :  { %217 = vmatpush.bf16.msra.mxu1 %v801_v27  ;;  %v1111_v5 = vld [vmem:[#allocation7 + $0x34] sm:$0xf0]  ;;  %v1088_v7 = vld [vmem:[#allocation5 + $0x4] sm:$0xf]  ;;  %v922_v8 = vld [vmem:[#allocation7 + $0xb0] sm:$0xf]  ;;  %v765_v17 = vor.u32 %v1089_v2, %v764_v63 }
  0x26   :  { %431 = vmatpush.bf16.msra.mxu2 %v875_v51  ;;  %v1127_v9 = vld [vmem:[#allocation7 + $0xb4] sm:$0xf0]  ;;  %v766_v10 = vld [vmem:[#allocation5 + $0x8] sm:$0xf0]  ;;  %v1118_v11 = vld [vmem:[#allocation7 + $0x74] sm:$0xf]  ;;  %v859_v16 = vor.u32 %v1111_v5, %v858_v4 }
  0x27   :  { %v892_v12 = vld [vmem:[#allocation7 + $0x78] sm:$0xf0]  ;;  %v1134_v14 = vld [vmem:[#allocation7 + $0xf4] sm:$0xf]  ;;  %v923_v18 = vor.u32 %v1127_v9, %v922_v8  ;;  %v850_v19 = vld [vmem:[#allocation7 + $0x20] sm:$0xf]  ;;  %v769_v21 = vor.u32 %v1088_v7, %v766_v10 }
  0x28   :  { %205 = vmatpush.bf16.msra.mxu0 %v789_v38  ;;  %444 = vmatpush.bf16.msra.mxu3 %v939_v54  ;;  %v95_v13 = vld [vmem:[#allocation3] sm:$0xff]  ;;  %v1109_v20 = vld [vmem:[#allocation7 + $0x24] sm:$0xf0]  ;;  %vm96_vm0 = vcmask 89088   ;;  %v895_v22 = vor.u32 %v1118_v11, %v892_v12  ;;  %v914_v23 = vld [vmem:[#allocation7 + $0xa0] sm:$0xf] }
  0x29   :  { %218 = vmatpush.bf16.msra.mxu1 %v793_v43  ;;  %v956_v15 = vld [vmem:[#allocation7 + $0xf8] sm:$0xf0]  ;;  %v1125_v24 = vld [vmem:[#allocation7 + $0xa4] sm:$0xf0]  ;;  %v1116_v26 = vld [vmem:[#allocation7 + $0x64] sm:$0xf]  ;;  %v827_v28 = vpack.c.bf16 %v95_v13, %v95_v13  ;;  %v851_v31 = vor.u32 %v1109_v20, %v850_v19 }
  0x2a   :  { %432 = vmatpush.bf16.msra.mxu2 %v867_v0  ;;  %v959_v25 = vor.u32 %v1134_v14, %v956_v15  ;;  %v884_v27 = vld [vmem:[#allocation7 + $0x68] sm:$0xf0]  ;;  %v1132_v29 = vld [vmem:[#allocation7 + $0xe4] sm:$0xf]  ;;  %vm826_vm1 = vmpackc.low %vm96_vm0, %vm96_vm0  ;;  %v915_v32 = vor.u32 %v1125_v24, %v914_v23  ;;  %vm753_vm2 = vcmask 7168  }
  0x2b   :  { %v948_v30 = vld [vmem:[#allocation7 + $0xe8] sm:$0xf0]  ;;  %v887_v33 = vor.u32 %v1116_v26, %v884_v27  ;;  %v1114_v35 = vld [vmem:[#allocation7 + $0x54] sm:$0xf]  ;;  %v876_v36 = vld [vmem:[#allocation7 + $0x58] sm:$0xf0] }
  0x2c   :  { %206 = vmatpush.bf16.msra.mxu0 %v781_v52  ;;  %445 = vmatpush.bf16.msra.mxu3 %v931_v3  ;;  %v951_v34 = vor.u32 %v1132_v29, %v948_v30  ;;  %v1130_v37 = vld [vmem:[#allocation7 + $0xd4] sm:$0xf]  ;;  %v940_v38 = vld [vmem:[#allocation7 + $0xd8] sm:$0xf0]  ;;  %v879_v39 = vor.u32 %v1114_v35, %v876_v36  ;;  %v1112_v41 = vld [vmem:[#allocation7 + $0x44] sm:$0xf] }
  0x2d   :  { %219 = vmatpush.bf16.msra.mxu1 %v785_v57  ;;  %v943_v40 = vor.u32 %v1130_v37, %v940_v38  ;;  %v868_v42 = vld [vmem:[#allocation7 + $0x48] sm:$0xf0]  ;;  %v1128_v43 = vld [vmem:[#allocation7 + $0xc4] sm:$0xf]  ;;  %v1110_v47 = vld [vmem:[#allocation7 + $0x34] sm:$0xf] }
  0x2e   :  { %433 = vmatpush.bf16.msra.mxu2 %v859_v16  ;;  %v932_v44 = vld [vmem:[#allocation7 + $0xc8] sm:$0xf0]  ;;  %v871_v45 = vor.u32 %v1112_v41, %v868_v42  ;;  %v860_v48 = vld [vmem:[#allocation7 + $0x38] sm:$0xf0]  ;;  %v1126_v49 = vld [vmem:[#allocation7 + $0xb4] sm:$0xf] }
  0x2f   :  { %v935_v46 = vor.u32 %v1128_v43, %v932_v44  ;;  %v924_v50 = vld [vmem:[#allocation7 + $0xb8] sm:$0xf0]  ;;  %v863_v51 = vor.u32 %v1110_v47, %v860_v48  ;;  %v1108_v53 = vld [vmem:[#allocation7 + $0x24] sm:$0xf]  ;;  %v852_v54 = vld [vmem:[#allocation7 + $0x28] sm:$0xf0] }
  0x30   :  { %207 = vmatpush.bf16.msra.mxu0 %v773_v1  ;;  %446 = vmatpush.bf16.msra.mxu3 %v923_v18  ;;  %v927_v52 = vor.u32 %v1126_v49, %v924_v50  ;;  %v1124_v55 = vld [vmem:[#allocation7 + $0xa4] sm:$0xf]  ;;  %v916_v56 = vld [vmem:[#allocation7 + $0xa8] sm:$0xf0]  ;;  %v855_v57 = vor.u32 %v1108_v53, %v852_v54  ;;  %v842_v59 = vld [vmem:[#allocation7 + $0x10] sm:$0xf] }
  0x31   :  { %220 = vmatpush.bf16.msra.mxu1 %v777_v6  ;;  %v919_v58 = vor.u32 %v1124_v55, %v916_v56  ;;  %v1107_v60 = vld [vmem:[#allocation7 + $0x14] sm:$0xf0]  ;;  %v906_v61 = vld [vmem:[#allocation7 + $0x90] sm:$0xf]  ;;  %v1106_v0 = vld [vmem:[#allocation7 + $0x14] sm:$0xf] }
  0x32   :  { %434 = vmatpush.bf16.msra.mxu2 %v851_v31  ;;  %v843_v62 = vor.u32 %v1107_v60, %v842_v59  ;;  %v1123_v63 = vld [vmem:[#allocation7 + $0x94] sm:$0xf0]  ;;  %v844_v1 = vld [vmem:[#allocation7 + $0x18] sm:$0xf0]  ;;  %v1122_v4 = vld [vmem:[#allocation7 + $0x94] sm:$0xf] }
  0x33   :  { %v907_v2 = vor.u32 %v1123_v63, %v906_v61  ;;  %v847_v3 = vor.u32 %v1106_v0, %v844_v1  ;;  %v908_v5 = vld [vmem:[#allocation7 + $0x98] sm:$0xf0]  ;;  %v834_v7 = vld [vmem:[#allocation7] sm:$0xf]  ;;  %v1105_v8 = vld [vmem:[#allocation7 + $0x4] sm:$0xf0] }
  0x34   :  { %208 = vmatpush.bf16.msra.mxu0 %v765_v17  ;;  %447 = vmatpush.bf16.msra.mxu3 %v915_v32  ;;  %v911_v6 = vor.u32 %v1122_v4, %v908_v5  ;;  %v898_v9 = vld [vmem:[#allocation7 + $0x80] sm:$0xf]  ;;  %v835_v10 = vor.u32 %v1105_v8, %v834_v7  ;;  %v1121_v11 = vld [vmem:[#allocation7 + $0x84] sm:$0xf0]  ;;  %v1104_v12 = vld [vmem:[#allocation7 + $0x4] sm:$0xf] }
  0x35   :  { %221 = vmatpush.bf16.msra.mxu1 %v769_v21  ;;  %v836_v13 = vld [vmem:[#allocation7 + $0x8] sm:$0xf0]  ;;  %v899_v14 = vor.u32 %v1121_v11, %v898_v9  ;;  %v1120_v16 = vld [vmem:[#allocation7 + $0x84] sm:$0xf]  ;;  %v1082_v19 = vld [vmem:[#allocation8 + $0xf0] sm:$0xf] }
  0x36   :  { %435 = vmatpush.bf16.msra.mxu2 %v843_v62  ;;  %v839_v15 = vor.u32 %v1104_v12, %v836_v13  ;;  %v900_v17 = vld [vmem:[#allocation7 + $0x88] sm:$0xf0]  ;;  %v1167_v20 = vld [vmem:[#allocation8 + $0xf4] sm:$0xf0]  ;;  %v1166_v21 = vld [vmem:[#allocation8 + $0xf4] sm:$0xf] }
  0x37   :  { %828 = vmatmul.msk.bf16.vlgmr.msra.gmra.mxu0 %vm826_vm1, %v827_v28  ;;  %v903_v18 = vor.u32 %v1120_v16, %v900_v17  ;;  %v1084_v23 = vld [vmem:[#allocation8 + $0xf8] sm:$0xf0]  ;;  %v1074_v24 = vld [vmem:[#allocation8 + $0xe0] sm:$0xf]  ;;  %v1164_v27 = vld [vmem:[#allocation8 + $0xe4] sm:$0xf] }
  0x38   :  { %455 = vmatpush.bf16.msrb.mxu0 %v895_v22  ;;  %831 = vmatmul.msk.bf16.vlgmr.msra.gmra.mxu1 %vm826_vm1, %v827_v28  ;;  %v1083_v22 = vor.u32 %v1167_v20, %v1082_v19  ;;  %v1087_v26 = vor.u32 %v1166_v21, %v1084_v23  ;;  %v1076_v28 = vld [vmem:[#allocation8 + $0xe8] sm:$0xf0]  ;;  %v1018_v29 = vld [vmem:[#allocation8 + $0x70] sm:$0xf]  ;;  %v1151_v31 = vld [vmem:[#allocation8 + $0x74] sm:$0xf0] }
  0x39   :  { %468 = vmatpush.bf16.msrb.mxu1 %v959_v25  ;;  %448 = vmatpush.bf16.msra.mxu3 %v907_v2  ;;  %v1165_v25 = vld [vmem:[#allocation8 + $0xe4] sm:$0xf0]  ;;  %v1150_v32 = vld [vmem:[#allocation8 + $0x74] sm:$0xf]  ;;  %v1019_v35 = vor.u32 %v1151_v31, %v1018_v29  ;;  %v1066_v37 = vld [vmem:[#allocation8 + $0xd0] sm:$0xf] }
  0x3a   :  { %436 = vmatpush.bf16.msra.mxu2 %v835_v10  ;;  %v1075_v30 = vor.u32 %v1165_v25, %v1074_v24  ;;  %v1163_v38 = vld [vmem:[#allocation8 + $0xd4] sm:$0xf0]  ;;  %v1010_v41 = vld [vmem:[#allocation8 + $0x60] sm:$0xf]  ;;  %v1149_v42 = vld [vmem:[#allocation8 + $0x64] sm:$0xf0] }
  0x3b   :  { %v1011_v43 = vor.u32 %v1149_v42, %v1010_v41  ;;  %v1148_v44 = vld [vmem:[#allocation8 + $0x64] sm:$0xf]  ;;  %v1058_v48 = vld [vmem:[#allocation8 + $0xc0] sm:$0xf]  ;;  %v1161_v49 = vld [vmem:[#allocation8 + $0xc4] sm:$0xf0] }
  0x3c   :  { %456 = vmatpush.bf16.msrb.mxu0 %v887_v33  ;;  %v1020_v33 = vld [vmem:[#allocation8 + $0x78] sm:$0xf0]  ;;  %v1146_v53 = vld [vmem:[#allocation8 + $0x54] sm:$0xf]  ;;  %v1160_v54 = vld [vmem:[#allocation8 + $0xc4] sm:$0xf]  ;;  %v1059_v60 = vor.u32 %v1161_v49, %v1058_v48 }
  0x3d   :  { %469 = vmatpush.bf16.msrb.mxu1 %v951_v34  ;;  %449 = vmatpush.bf16.msra.mxu3 %v899_v14  ;;  %v1079_v34 = vor.u32 %v1164_v27, %v1076_v28  ;;  %v1023_v36 = vor.u32 %v1150_v32, %v1020_v33  ;;  %v1060_v55 = vld [vmem:[#allocation8 + $0xc8] sm:$0xf0]  ;;  %v1004_v56 = vld [vmem:[#allocation8 + $0x58] sm:$0xf0]  ;;  %v994_v59 = vld [vmem:[#allocation8 + $0x40] sm:$0xf] }
  0x3e   :  { %683 = vmatpush.bf16.msrb.mxu2 %v1019_v35  ;;  %v1145_v61 = vld [vmem:[#allocation8 + $0x44] sm:$0xf0]  ;;  %v1144_v62 = vld [vmem:[#allocation8 + $0x44] sm:$0xf]  ;;  %v996_v63 = vld [vmem:[#allocation8 + $0x48] sm:$0xf0]  ;;  %v1063_v0 = vor.u32 %v1160_v54, %v1060_v55 }
  0x3f   :  { %v1050_v1 = vld [vmem:[#allocation8 + $0xb0] sm:$0xf]  ;;  %v1159_v2 = vld [vmem:[#allocation8 + $0xb4] sm:$0xf0]  ;;  %v1052_v4 = vld [vmem:[#allocation8 + $0xb8] sm:$0xf0]  ;;  %v995_v5 = vor.u32 %v1145_v61, %v994_v59 }
  0x40   :  { %457 = vmatpush.bf16.msrb.mxu0 %v879_v39  ;;  %v1162_v39 = vld [vmem:[#allocation8 + $0xd4] sm:$0xf]  ;;  %v1051_v7 = vor.u32 %v1159_v2, %v1050_v1  ;;  %v1042_v9 = vld [vmem:[#allocation8 + $0xa0] sm:$0xf]  ;;  %v1157_v10 = vld [vmem:[#allocation8 + $0xa4] sm:$0xf0] }
  0x41   :  { %470 = vmatpush.bf16.msrb.mxu1 %v943_v40  ;;  %696 = vmatpush.bf16.msrb.mxu3 %v1083_v22  ;;  %v1068_v40 = vld [vmem:[#allocation8 + $0xd8] sm:$0xf0]  ;;  %v115_v11 = vld [vmem:[%s1365_s2] sm:$0x3]  ;;  %v1156_v12 = vld [vmem:[#allocation8 + $0xa4] sm:$0xf]  ;;  %v1043_v14 = vor.u32 %v1157_v10, %v1042_v9 }
  0x42   :  { %v1071_v50 = vor.u32 %v1162_v39, %v1068_v40  ;;  %684 = vmatpush.bf16.msrb.mxu2 %v1011_v43  ;;  %v1044_v13 = vld [vmem:[#allocation8 + $0xa8] sm:$0xf0]  ;;  %v118_v17 = vperm.slane %v115_v11, 1  ;;  %v986_v28 = vld [vmem:[#allocation8 + $0x30] sm:$0xf] }
  0x43   :  { %v1047_v16 = vor.u32 %v1156_v12, %v1044_v13  ;;  %v1143_v29 = vld [vmem:[#allocation8 + $0x34] sm:$0xf0]  ;;  %v988_v32 = vld [vmem:[#allocation8 + $0x38] sm:$0xf0]  ;;  %v978_v40 = vld [vmem:[#allocation8 + $0x20] sm:$0xf] }
  0x44   :  { %458 = vmatpush.bf16.msrb.mxu0 %v871_v45  ;;  %v1012_v45 = vld [vmem:[#allocation8 + $0x68] sm:$0xf0]  ;;  %v987_v31 = vor.u32 %v1143_v29, %v986_v28  ;;  %v1155_v35 = vld [vmem:[#allocation8 + $0x94] sm:$0xf0]  ;;  %v1141_v41 = vld [vmem:[#allocation8 + $0x24] sm:$0xf0] }
  0x45   :  { %471 = vmatpush.bf16.msrb.mxu1 %v935_v46  ;;  %697 = vmatpush.bf16.msrb.mxu3 %v1075_v30  ;;  %v1067_v46 = vor.u32 %v1163_v38, %v1066_v37  ;;  %v1015_v47 = vor.u32 %v1148_v44, %v1012_v45  ;;  %v1142_v30 = vld [vmem:[#allocation8 + $0x34] sm:$0xf]  ;;  %v1036_v38 = vld [vmem:[#allocation8 + $0x98] sm:$0xf0]  ;;  %v1140_v42 = vld [vmem:[#allocation8 + $0x24] sm:$0xf]  ;;  %v979_v43 = vor.u32 %v1141_v41, %v978_v40 }
  0x46   :  { %v991_v33 = vor.u32 %v1142_v30, %v988_v32  ;;  %v980_v44 = vld [vmem:[#allocation8 + $0x28] sm:$0xf0]  ;;  %v1152_v48 = vld [vmem:[#allocation8 + $0x84] sm:$0xf]  ;;  %v1138_v55 = vld [vmem:[#allocation8 + $0x14] sm:$0xf] }
  0x47   :  { %v983_v45 = vor.u32 %v1140_v42, %v980_v44  ;;  %v1137_v59 = vld [vmem:[#allocation8 + $0x4] sm:$0xf0]  ;;  %v737_v29 = vld [vmem:[%s1370_s7] sm:$0x3] }
  0x48   :  { %459 = vmatpush.bf16.msrb.mxu0 %v863_v51  ;;  %v1002_v51 = vld [vmem:[#allocation8 + $0x50] sm:$0xf]  ;;  %v1174_v42 = vld [vmem:[#allocation2] ss:$0 sm:$0xff] }
  0x49   :  { %472 = vmatpush.bf16.msrb.mxu1 %v927_v52  ;;  %v1147_v52 = vld [vmem:[#allocation8 + $0x54] sm:$0xf0]  ;;  %698 = vmatpush.bf16.msrb.mxu3 %v1067_v46  ;;  %v1026_v46 = vld [vmem:[#allocation8 + $0x80] sm:$0xf] }
  0x4c   :  { %460 = vmatpush.bf16.msrb.mxu0 %v855_v57  ;;  %v1003_v57 = vor.u32 %v1147_v52, %v1002_v51  ;;  %v970_v52 = vld [vmem:[#allocation8 + $0x10] sm:$0xf] }
  0x4d   :  { %473 = vmatpush.bf16.msrb.mxu1 %v919_v58  ;;  %v1007_v58 = vor.u32 %v1146_v53, %v1004_v56  ;;  %699 = vmatpush.bf16.msrb.mxu3 %v1059_v60  ;;  %v1139_v53 = vld [vmem:[#allocation8 + $0x14] sm:$0xf0]  ;;  %v972_v56 = vld [vmem:[#allocation8 + $0x18] sm:$0xf0]  ;;  %v1136_v60 = vld [vmem:[#allocation8 + $0x4] sm:$0xf] }
  0x4e   :  { %685 = vmatpush.bf16.msrb.mxu2 %v1003_v57  ;;  %v971_v54 = vor.u32 %v1139_v53, %v970_v52  ;;  %v975_v57 = vor.u32 %v1138_v55, %v972_v56 }
  0x50   :  { %461 = vmatpush.bf16.msrb.mxu0 %v847_v3  ;;  %v1158_v3 = vld [vmem:[#allocation8 + $0xb4] sm:$0xf] }
  0x51   :  { %474 = vmatpush.bf16.msrb.mxu1 %v911_v6  ;;  %v999_v6 = vor.u32 %v1144_v62, %v996_v63  ;;  %v1055_v8 = vor.u32 %v1158_v3, %v1052_v4  ;;  %700 = vmatpush.bf16.msrb.mxu3 %v1051_v7  ;;  %v964_v62 = vld [vmem:[#allocation8 + $0x8] sm:$0xf0] }
  0x52   :  { %686 = vmatpush.bf16.msrb.mxu2 %v995_v5  ;;  %v967_v63 = vor.u32 %v1136_v60, %v964_v62 }
  0x54   :  { %462 = vmatpush.bf16.msrb.mxu0 %v839_v15  ;;  %v117_v15 = vperm.slane %v115_v11, 0 }
  0x55   :  { %475 = vmatpush.bf16.msrb.mxu1 %v903_v18  ;;  %701 = vmatpush.bf16.msrb.mxu3 %v1043_v14 }
  0x56   :  { %687 = vmatpush.bf16.msrb.mxu2 %v987_v31 }
  0x58   :  { %709 = vmatpush.bf16.msra.mxu0 %v1023_v36  ;;  %v1154_v36 = vld [vmem:[#allocation8 + $0x94] sm:$0xf] }
  0x59   :  { %722 = vmatpush.bf16.msra.mxu1 %v1087_v26  ;;  %v1039_v39 = vor.u32 %v1154_v36, %v1036_v38  ;;  %v740_v36 = vperm.slane %v737_v29, 1 }
  0x5a   :  { %688 = vmatpush.bf16.msrb.mxu2 %v979_v43 }
  0x5c   :  { %710 = vmatpush.bf16.msra.mxu0 %v1015_v47  ;;  %v1153_v47 = vld [vmem:[#allocation8 + $0x84] sm:$0xf0] }
  0x5d   :  { %723 = vmatpush.bf16.msra.mxu1 %v1079_v34  ;;  %v1034_v34 = vld [vmem:[#allocation8 + $0x90] sm:$0xf]  ;;  %v1027_v49 = vor.u32 %v1153_v47, %v1026_v46 }
  0x5e   :  { %v1035_v37 = vor.u32 %v1155_v35, %v1034_v34  ;;  %689 = vmatpush.bf16.msrb.mxu2 %v971_v54  ;;  %v739_v35 = vperm.slane %v737_v29, 0 }
  0x60   :  { %711 = vmatpush.bf16.msra.mxu0 %v1007_v58  ;;  %702 = vmatpush.bf16.msrb.mxu3 %v1035_v37  ;;  %v962_v58 = vld [vmem:[#allocation8] sm:$0xf] }
  0x61   :  { %724 = vmatpush.bf16.msra.mxu1 %v1071_v50  ;;  %v1028_v50 = vld [vmem:[#allocation8 + $0x88] sm:$0xf0]  ;;  %v963_v61 = vor.u32 %v1137_v59, %v962_v58 }
  0x62   :  { %v1031_v51 = vor.u32 %v1152_v48, %v1028_v50 }
  0x63   :  { %690 = vmatpush.bf16.msrb.mxu2 %v963_v61 }
  0x64   :  { %712 = vmatpush.bf16.msra.mxu0 %v999_v6  ;;  %703 = vmatpush.bf16.msrb.mxu3 %v1027_v49 }
  0x65   :  { %725 = vmatpush.bf16.msra.mxu1 %v1063_v0  ;;  %v263_v0 = vld [vmem:[%s1367_s4] sm:$0x3] }
  0x66   :  { %v266_v1 = vperm.slane %v263_v0, 1  ;;  %v265_v6 = vperm.slane %v263_v0, 0 }
  0x68   :  { %713 = vmatpush.bf16.msra.mxu0 %v991_v33 }
  0x69   :  { %726 = vmatpush.bf16.msra.mxu1 %v1055_v8 }
  0x6c   :  { %714 = vmatpush.bf16.msra.mxu0 %v983_v45 }
  0x6d   :  { %727 = vmatpush.bf16.msra.mxu1 %v1047_v16 }
  0x70   :  { %715 = vmatpush.bf16.msra.mxu0 %v975_v57 }
  0x71   :  { %728 = vmatpush.bf16.msra.mxu1 %v1039_v39 }
  0x74   :  { %716 = vmatpush.bf16.msra.mxu0 %v967_v63 }
  0x75   :  { %729 = vmatpush.bf16.msra.mxu1 %v1031_v51 }
  0xb4   :  { %v210_v18 = vpop.f32.mrf.mxu0 }
  0xb5   :  { %v211_v19 = vadd.f32 %v210_v18, %v117_v15  ;;  %v223_v20 = vpop.f32.mrf.mxu1 }
  0xb6   :  { %v224_v21 = vadd.f32 %v223_v20, %v118_v17  ;;  %v517_v20 = vld [vmem:[%s1369_s6] sm:$0x3] }
  0xb7   :  { %v227_v22 = vmax.f32 %v211_v19, 0.0 }
  0xb8   :  { %v228_v23 = vmax.f32 %v224_v21, 0.0  ;;  %v520_v21 = vperm.slane %v517_v20, 1 }
  0xb9   :  { %v229_v24 = vpack.c.bf16 %v227_v22, %v227_v22 }
  0xba   :  { %v230_v25 = vpack.c.bf16 %v228_v23, %v228_v23 }
  0xbb   :  { %437 = vmatmul.bf16.vlgmr.msra.gmra.mxu2 %v229_v24  ;;  %463 = vmatmul.bf16.vlgmr.msrb.gmra.mxu0 %v229_v24 }
  0xbc   :  { %450 = vmatmul.bf16.vlgmr.msra.gmra.mxu3 %v230_v25  ;;  %476 = vmatmul.bf16.vlgmr.msrb.gmra.mxu1 %v230_v25  ;;  %v212_v26 = vpop.f32.mrf.mxu0 }
  0xbd   :  { %v225_v27 = vpop.f32.mrf.mxu1  ;;  %v519_v26 = vperm.slane %v517_v20, 0 }
 0x138   :  { %v464_v2 = vpop.f32.mrf.mxu0 }
 0x139   :  { %v465_v3 = vadd.f32 %v464_v2, %v266_v1  ;;  %v477_v4 = vpop.f32.mrf.mxu1 }
 0x13b   :  { %v478_v5 = vadd.f32 %v477_v4, %v465_v3 }
 0x13d   :  { %v482_v7 = vmax.f32 %v478_v5, 0.0 }
 0x13e   :  { %v438_v8 = vpop.f32.mrf.mxu2 }
 0x13f   :  { %v484_v9 = vpack.c.bf16 %v482_v7, %v482_v7  ;;  %v439_v10 = vadd.f32 %v438_v8, %v265_v6  ;;  %v451_v11 = vpop.f32.mrf.mxu3 }
 0x140   :  { %v466_v12 = vpop.f32.mrf.mxu0 }
 0x141   :  { %v452_v13 = vadd.f32 %v451_v11, %v439_v10  ;;  %v479_v14 = vpop.f32.mrf.mxu1  ;;  %704 = vmatmul.bf16.vlgmr.msrb.gmra.mxu3 %v484_v9  ;;  %730 = vmatmul.bf16.vlgmr.msra.gmra.mxu1 %v484_v9 }
 0x143   :  { %v481_v15 = vmax.f32 %v452_v13, 0.0 }
 0x145   :  { %v483_v16 = vpack.c.bf16 %v481_v15, %v481_v15 }
 0x146   :  { %v440_v17 = vpop.f32.mrf.mxu2 }
 0x147   :  { %v453_v18 = vpop.f32.mrf.mxu3  ;;  %691 = vmatmul.bf16.vlgmr.msrb.gmra.mxu2 %v483_v16  ;;  %717 = vmatmul.bf16.vlgmr.msra.gmra.mxu0 %v483_v16 }
 0x1be   :  { %v731_v19 = vpop.f32.mrf.mxu1 }
 0x1c4   :  { %v705_v22 = vpop.f32.mrf.mxu3  ;;  %v718_v23 = vpop.f32.mrf.mxu0 }
 0x1c5   :  { %v719_v24 = vadd.f32 %v718_v23, %v520_v21 }
 0x1c6   :  { %v733_v25 = vpop.f32.mrf.mxu1 }
 0x1c7   :  { %v732_v27 = vadd.f32 %v731_v19, %v719_v24 }
 0x1c9   :  { %v736_v33 = vmax.f32 %v732_v27, 0.0 }
 0x1ca   :  { %v692_v28 = vpop.f32.mrf.mxu2 }
 0x1cb   :  { %v693_v30 = vadd.f32 %v692_v28, %v519_v26  ;;  %v744_v39 = vmul.f32 %v740_v36, %v736_v33 }
 0x1cc   :  { %v707_v31 = vpop.f32.mrf.mxu3  ;;  %v720_v32 = vpop.f32.mrf.mxu0 }
 0x1cd   :  { %v706_v34 = vadd.f32 %v705_v22, %v693_v30 }
 0x1cf   :  { %v735_v37 = vmax.f32 %v706_v34, 0.0 }
 0x1d1   :  { %v743_v38 = vmul.f32 %v739_v35, %v735_v37 }
 0x1d2   :  { %v694_v40 = vpop.f32.mrf.mxu2 }
 0x1d3   :  { %v745_v41 = vadd.f32 %v744_v39, %v743_v38 }
 0x1d5   :  { %746 = vadd.xlane.f32.xlu0 %v745_v41 }
 0x248   :  { %v747_v43 = vpop.xlane.xlu0 %746 }
 0x249   :  { %v752_v44 = vadd.f32 %v1174_v42, %v747_v43 }
 0x24b   :  { %754 = vst.msk [vmem:[%s1372_s9] sm:$0xff] %vm753_vm2, %v752_v44 }
 0x24c   :  { %759 = vsyncpa [#allocation4], 1 }
 0x24d   :  { %760 = vsyncpa [#allocation6], 1 }
 0x24e   :  { %761 = vsyncpa [#allocation9], 1 }

</bundles_post_ra>
